<compile_context>
chip_gen: v6e
topology: v6e:2x2x1
jax: 0.10.0
libtpu: 0.0.40
codegen_flags: <defaults>
</compile_context>

<pallas_src>
import functools

import jax
import jax.numpy as jnp
from jax.experimental import pallas as pl
from jax.experimental.pallas import tpu as pltpu


# ----------------------------------------------------------------------------
# Pallas kernel: full Controller.forward compute (single invocation, no grid).
# ----------------------------------------------------------------------------
def _controller_kernel(x_ref, w1_ref, wd_ref, wo_ref, out_ref, *, l: int):
    f32 = jnp.float32
    x = x_ref[...]                                          # (1, 2n+m+n_xi) = [y|oy|ou|xi]

    # base[j] = C1[j]@xi + D12[j]@w   (plant dynamics + w folded into W1)
    base = jnp.dot(x, w1_ref[...], preferred_element_type=f32)          # (1, l)

    wd = wd_ref[...]                                        # (l+1, l)
    d11_t = wd[0:l, :]                                      # D11 transposed
    inv_lam = wd[l:l + 1, :]                                # (1, l) = 1/Lambda

    # epsilon recursion.  D11 is strictly lower-triangular, so l unmasked
    # fixed-point sweeps reproduce the sequential recursion exactly.
    eps = jnp.tanh(base * inv_lam)                          # step 0 (eps was 0)
    for _ in range(l - 1):                                  # l is small & static
        v = base + jnp.dot(eps, d11_t, preferred_element_type=f32)
        eps = jnp.tanh(v * inv_lam)

    # [xi_new | 400*u] in one fused matmul (Einv, plant and 400x folded in).
    out = jnp.dot(jnp.concatenate([x, eps], axis=1), wo_ref[...],
                  preferred_element_type=f32)               # (1, n_xi+m)
    out_ref[...] = out


# ----------------------------------------------------------------------------
# Parameter construction (mirrors PsiU.__init__ / set_model_param exactly)
# ----------------------------------------------------------------------------
def make_params(key, n, m, n_xi, l, std=0.1):
    ks = jax.random.split(key, 9)
    X = jax.random.normal(ks[0], (2 * n_xi + l, 2 * n_xi + l), jnp.float32) * std
    Y = jax.random.normal(ks[1], (n_xi, n_xi), jnp.float32) * std
    B2 = jax.random.normal(ks[2], (n_xi, n), jnp.float32) * std
    C2 = jax.random.normal(ks[3], (m, n_xi), jnp.float32) * std
    D21 = jax.random.normal(ks[4], (m, l), jnp.float32) * std
    D22 = jax.random.normal(ks[5], (m, n), jnp.float32) * std
    D12 = jax.random.normal(ks[6], (l, n), jnp.float32) * std
    # synthetic plant dynamics f(t, y, u) = A y + B u  (f is a Controller ctor arg)
    A = jax.random.normal(ks[7], (n, n), jnp.float32) * std
    B = jax.random.normal(ks[8], (n, m), jnp.float32) * std

    eps = 0.001
    H = X.T @ X + eps * jnp.eye(2 * n_xi + l, dtype=jnp.float32)
    H11 = H[:n_xi, :n_xi]
    H21 = H[n_xi:n_xi + l, :n_xi]
    H22 = H[n_xi:n_xi + l, n_xi:n_xi + l]
    H31 = H[n_xi + l:, :n_xi]
    H32 = H[n_xi + l:, n_xi:n_xi + l]
    H33 = H[n_xi + l:, n_xi + l:]
    Fm = H31
    B1 = H32
    E = 0.5 * (H11 + H33 + Y - Y.T)
    Lambda = 0.5 * jnp.diag(H22)
    D11 = -jnp.tril(H22, k=-1)
    C1 = -H21
    Einv = jnp.linalg.inv(E)
    return dict(A=A, B=B, F=Fm, B1=B1, B2=B2, C1=C1, C2=C2,
                D11=D11, D12=D12, D21=D21, D22=D22,
                Lambda=Lambda, Einv=Einv)


# ----------------------------------------------------------------------------
# One-time weight preparation (plain-JAX glue): fold plant, Einv, 400x; stack.
# ----------------------------------------------------------------------------
def prepare_weights(p):
    f32 = jnp.float32
    EinvF = p["Einv"] @ p["F"]
    EinvB1 = p["Einv"] @ p["B1"]
    EinvB2 = p["Einv"] @ p["B2"]
    At = p["A"].T                           # (n, n)
    Bt = p["B"].T                           # (m, n)

    def fold_w(M):
        # rows for [y | oy | ou] such that [y|oy|ou] @ rows == w @ M,
        # with w = y - A@oy - B@ou  (row-vector convention).
        return jnp.concatenate([M, -(At @ M), -(Bt @ M)], axis=0)

    # base = C1 xi + D12 w  -> rows ordered [y | oy | ou | xi]
    W1 = jnp.concatenate([fold_w(p["D12"].T), p["C1"].T],
                         axis=0).astype(f32)                       # (2n+m+n_xi, l)
    # D11 recursion block + 1/Lambda row
    W_d11 = jnp.concatenate(
        [p["D11"].T, (1.0 / p["Lambda"]).reshape(1, -1)], axis=0).astype(f32)  # (l+1, l)
    # [xi_new | 400*u] -> rows ordered [y | oy | ou | xi | eps]
    W_xi = jnp.concatenate([fold_w(EinvB2.T), EinvF.T, EinvB1.T], axis=0)
    W_u = 400.0 * jnp.concatenate(
        [fold_w(p["D22"].T), p["C2"].T, p["D21"].T], axis=0)
    W_out = jnp.concatenate([W_xi, W_u], axis=1).astype(f32)       # (2n+m+n_xi+l, n_xi+m)
    return dict(W1=W1, W_d11=W_d11, W_out=W_out)


# ----------------------------------------------------------------------------
# Wrapper: Controller.forward(t, y_, xi, omega) -> (u_, xi_, omega_)
# ----------------------------------------------------------------------------
def controller_forward(t, y_, xi, omega, weights):
    del t  # only used by the (identically-zero) setpoint branch; our f ignores t
    f32 = jnp.float32
    oy, ou = omega
    n_xi = xi.shape[0]
    m = ou.shape[0]
    l = weights["W_d11"].shape[1]

    # single packed state row: [y | oy | ou | xi]
    x_row = jnp.concatenate(
        [y_.astype(f32), oy.astype(f32), ou.astype(f32), xi.astype(f32)]
    ).reshape(1, -1)

    vmem = pl.BlockSpec(memory_space=pltpu.MemorySpace.VMEM)
    out_row = pl.pallas_call(
        functools.partial(_controller_kernel, l=l),
        out_shape=jax.ShapeDtypeStruct((1, n_xi + m), f32),
        in_specs=[vmem] * 4,
        out_specs=vmem,
    )(x_row, weights["W1"], weights["W_d11"], weights["W_out"])

    xi_ = out_row[0, :n_xi]
    u_ = out_row[0, n_xi:]
    omega_ = (y_, u_)
    return u_, xi_, omega_
    # TODO(synk): the `use_sp` branch of Controller is omitted — Input(...,
    # active=True) uses std=0.0, so sp(t) is identically zero.


# ----------------------------------------------------------------------------
# Pure-JAX reference (direct transcription of the PyTorch code) for checking.
# ----------------------------------------------------------------------------
def controller_reference(t, y_, xi, omega, p):
    oy, ou = omega
    psi_x = p["A"] @ oy + p["B"] @ ou
    w = y_ - psi_x
    l = p["Lambda"].shape[0]
    eps = jnp.zeros(l, jnp.float32)
    v = p["C1"][0] @ xi + p["D12"][0] @ w
    eps = eps.at[0].set(jnp.tanh(v / p["Lambda"][0]))
    for i in range(1, l):
        v = p["C1"][i] @ xi + p["D11"][i] @ eps + p["D12"][i] @ w
        eps = eps.at[i].set(jnp.tanh(v / p["Lambda"][i]))
    E_xi = p["F"] @ xi + p["B1"] @ eps + p["B2"] @ w
    xi_new = p["Einv"] @ E_xi
    u = p["C2"] @ xi + p["D21"] @ eps + p["D22"] @ w
    u_ = 400.0 * u
    return u_, xi_new, (y_, u_)


if __name__ == "__main__":
    # Small, forward-consistent sizes: plant state n=4, input m=2,
    # controller state n_xi=8, REN depth l=4.
    n, m, n_xi, l = 4, 2, 8, 4

    key = jax.random.PRNGKey(0)
    kp, ky, kxi, koy, kou = jax.random.split(key, 5)
    params = make_params(kp, n, m, n_xi, l)
    weights = prepare_weights(params)

    t = 0
    y_ = jax.random.normal(ky, (n,), jnp.float32)
    xi = jax.random.normal(kxi, (n_xi,), jnp.float32)
    omega = (jax.random.normal(koy, (n,), jnp.float32),
             jax.random.normal(kou, (m,), jnp.float32))

    u_, xi_, omega_ = controller_forward(t, y_, xi, omega, weights)
    jax.block_until_ready((u_, xi_, omega_))

    # correctness check against the pure-JAX transcription
    u_ref, xi_ref, _ = controller_reference(t, y_, xi, omega, params)
    assert jnp.allclose(u_, u_ref, rtol=1e-2, atol=1e-3), (u_, u_ref)
    assert jnp.allclose(xi_, xi_ref, rtol=1e-2, atol=1e-3), (xi_, xi_ref)

    print("KERNEL_OK")
</pallas_src>

<mosaic_0001>
module attributes {stable_mosaic.version = 11 : i64} {
  func.func @_controller_kernel(%arg0: memref<1x18xf32, #tpu.memory_space<vmem>>, %arg1: memref<18x4xf32, #tpu.memory_space<vmem>>, %arg2: memref<5x4xf32, #tpu.memory_space<vmem>>, %arg3: memref<22x10xf32, #tpu.memory_space<vmem>>, %arg4: memref<1x10xf32, #tpu.memory_space<vmem>>) attributes {dimension_semantics = [], scalar_prefetch = 0 : i64, scratch_operands = 0 : i64, tpu.core_type = #tpu.core_type<tc>} {
    %c0 = arith.constant 0 : index
    %c0_0 = arith.constant 0 : index
    %0 = vector.load %arg0[%c0, %c0_0] : memref<1x18xf32, #tpu.memory_space<vmem>>, vector<1x18xf32>
    %c0_1 = arith.constant 0 : index
    %c0_2 = arith.constant 0 : index
    %1 = vector.load %arg1[%c0_1, %c0_2] : memref<18x4xf32, #tpu.memory_space<vmem>>, vector<18x4xf32>
    %cst = arith.constant dense<0.000000e+00> : vector<1x4xf32>
    %2 = tpu.matmul %0, %1, %cst {dimension_numbers = #tpu.dot_dimension_numbers<[1], [0], [0], [1], [0, 0, 1, 1], [], []>} : vector<1x18xf32>, vector<18x4xf32>, vector<1x4xf32> -> vector<1x4xf32>
    %c0_3 = arith.constant 0 : index
    %c0_4 = arith.constant 0 : index
    %3 = vector.load %arg2[%c0_3, %c0_4] : memref<5x4xf32, #tpu.memory_space<vmem>>, vector<5x4xf32>
    %4 = vector.extract_strided_slice %3 {offsets = [0, 0], sizes = [4, 4], strides = [1, 1]} : vector<5x4xf32> to vector<4x4xf32>
    %5 = vector.extract_strided_slice %3 {offsets = [4, 0], sizes = [1, 4], strides = [1, 1]} : vector<5x4xf32> to vector<1x4xf32>
    %6 = arith.mulf %2, %5 : vector<1x4xf32>
    %7 = math.tanh %6 : vector<1x4xf32>
    %cst_5 = arith.constant dense<0.000000e+00> : vector<1x4xf32>
    %8 = tpu.matmul %7, %4, %cst_5 {dimension_numbers = #tpu.dot_dimension_numbers<[1], [0], [0], [1], [0, 0, 1, 1], [], []>} : vector<1x4xf32>, vector<4x4xf32>, vector<1x4xf32> -> vector<1x4xf32>
    %9 = arith.addf %2, %8 : vector<1x4xf32>
    %10 = arith.mulf %9, %5 : vector<1x4xf32>
    %11 = math.tanh %10 : vector<1x4xf32>
    %cst_6 = arith.constant dense<0.000000e+00> : vector<1x4xf32>
    %12 = tpu.matmul %11, %4, %cst_6 {dimension_numbers = #tpu.dot_dimension_numbers<[1], [0], [0], [1], [0, 0, 1, 1], [], []>} : vector<1x4xf32>, vector<4x4xf32>, vector<1x4xf32> -> vector<1x4xf32>
    %13 = arith.addf %2, %12 : vector<1x4xf32>
    %14 = arith.mulf %13, %5 : vector<1x4xf32>
    %15 = math.tanh %14 : vector<1x4xf32>
    %cst_7 = arith.constant dense<0.000000e+00> : vector<1x4xf32>
    %16 = tpu.matmul %15, %4, %cst_7 {dimension_numbers = #tpu.dot_dimension_numbers<[1], [0], [0], [1], [0, 0, 1, 1], [], []>} : vector<1x4xf32>, vector<4x4xf32>, vector<1x4xf32> -> vector<1x4xf32>
    %17 = arith.addf %2, %16 : vector<1x4xf32>
    %18 = arith.mulf %17, %5 : vector<1x4xf32>
    %19 = math.tanh %18 : vector<1x4xf32>
    %20 = tpu.concatenate %0, %19 in 1 : vector<1x18xf32>, vector<1x4xf32> -> vector<1x22xf32>
    %c0_8 = arith.constant 0 : index
    %c0_9 = arith.constant 0 : index
    %21 = vector.load %arg3[%c0_8, %c0_9] : memref<22x10xf32, #tpu.memory_space<vmem>>, vector<22x10xf32>
    %cst_10 = arith.constant dense<0.000000e+00> : vector<1x10xf32>
    %22 = tpu.matmul %20, %21, %cst_10 {dimension_numbers = #tpu.dot_dimension_numbers<[1], [0], [0], [1], [0, 0, 1, 1], [], []>} : vector<1x22xf32>, vector<22x10xf32>, vector<1x10xf32> -> vector<1x10xf32>
    %c0_11 = arith.constant 0 : index
    %c0_12 = arith.constant 0 : index
    %23 = vector.load %arg4[%c0_11, %c0_12] : memref<1x10xf32, #tpu.memory_space<vmem>>, vector<1x10xf32>
    tpu.vector_store %arg4[%c0_11, %c0_12], %22 {strides = array<i32>} : memref<1x10xf32, #tpu.memory_space<vmem>>, vector<1x10xf32>,
    return
  }
}

</mosaic_0001>

<bundles_post_ra>
// kernel: tpu_custom_call.1
= control target key start
LH: loop header
LB: loop body
LE: loop exit
PB: predicated region body
PF: predicated region fallthrough
CT: control target
= control target key end

     0   :  { %vm26_vm0 = vcmask 1041408   ;;  %v531_v1 = vmov 0.0   ;;  %s597_s0 = inlined_call_operand.vmem [shape: f32[1,18], index: 0, kind: input, shape index: {}]   ;;  %s598_s1 = inlined_call_operand.vmem [shape: f32[18,4], index: 1, kind: input, shape index: {}]   ;;  %s599_s2 = inlined_call_operand.vmem [shape: f32[5,4], index: 2, kind: input, shape index: {}]   ;;  %s600_s3 = inlined_call_operand.vmem [shape: f32[22,10], index: 3, kind: input, shape index: {}]   ;;  %s601_s4 = inlined_call_operand.hbm [shape: f32[1,10], index: 4, kind: output, shape index: {}]  }
   0x1   :  { %v21_v0 = vld [vmem:[%s598_s1 + $0x10] sm:$0x3]  ;;  %464 = vmatprep.subr.mxu0 %v531_v1  ;;  %v20_v2 = vld [vmem:[%s598_s1 + $0x8] sm:$0xff]  ;;  %473 = vmatprep.subr.mxu1 %v531_v1 }
   0x2   :  { %9 = vsyncpa [#allocation3], 0  ;;  %465 = vmatpush3.msk.msra.mxu0 %vm26_vm0, %v21_v0  ;;  %vm532_vm1 = vmmov 0   ;;  %v19_v3 = vld [vmem:[%s598_s1] sm:$0xff]  ;;  %vm22_vm2 = vcmask 146432   ;;  %vm110_vm3 = vcmask 1043456  }
   0x3   :  { %470 = vmatprep.mubr.msk.f32.mxu0 %vm532_vm1, %v531_v1  ;;  %466 = vmatprep.subr.mxu0 %v531_v1  ;;  %v18_v4 = vld [vmem:[%s597_s0] sm:$0x1]  ;;  %vm106_vm4 = vcmask 31744   ;;  %v345_v21 = vld [vmem:[%s600_s3 + $0x10] sm:$0x3f]  ;;  %vm350_vm5 = vcmask 1045504  }
   0x4   :  { %475 = vmatprep.mubr.msk.f32.mxu1 %vm532_vm1, %v531_v1  ;;  %467 = vmatpush3.msra.mxu0 %v20_v2  ;;  %v100_v5 = vld [vmem:[%s599_s2] sm:$0x1f]  ;;  %v344_v22 = vld [vmem:[%s600_s3 + $0x8] sm:$0xff]  ;;  %s533_s28 = smov 18   ;;  %vm346_vm6 = vcmask 179200   ;;  %s534_s29 = smov [#allocation2]  }
   0x5   :  { %468 = vmatprep.subr.mxu0 %v531_v1  ;;  %474 = vmatpush3.msk.msra.mxu1 %vm110_vm3, %v100_v5  ;;  %v102_v6 = vrot.slane %v100_v5, 4  ;;  %v343_v27 = vld [vmem:[%s600_s3] sm:$0xff]  ;;  %s432_s30 = sshll.u32 %s534_s29, 4  ;;  %vm424_vm7 = vcmask 73728   ;;  %s433_s30 = int_to_ptr.vmem [resolvable:$true] %s432_s30 }
   0x6   :  { %469 = vmatpush3.msra.mxu0 %v19_v3  ;;  %478 = vmatprep.subr.mxu1 %v531_v1  ;;  %s509_s5 = scalar_lea.vmem %s433_s30, 16  ;;  %s513_s6 = scalar_lea.vmem %s433_s30, 32 }
   0x7   :  { %471 = vmatmul.mubr.msk.f32.vlgmr.msra.gmra.mxu0 %vm22_vm2, %v18_v4  ;;  %483 = vmatprep.subr.mxu0 %v531_v1  ;;  %p510_p0 = scmp.ne.s32.totalorder %s433_s30, %s509_s5  ;;  %p514_p1 = scmp.lt.s32.totalorder %s433_s30, %s433_s30 }
   0x8   :  { %485 = vmatprep.mubr.msk.f32.mxu0 %vm532_vm1, %v531_v1  ;;  %484 = vmatpush3.msk.msra.mxu0 %vm110_vm3, %v100_v5  ;;  %p515_p2 = scmp.lt.s32.totalorder %s513_s6, %s509_s5 }
   0xa   :  { %p516_p3 = por %p515_p2, %p514_p1 }
   0xc   :  { %p517_p4 = pnand %p516_p3, %p510_p0 }
  0xc7   :  { %v96_v7 = vpop.f32.mrf.mxu0 }
  0xc8   :  { %v104_v8 = vmul.f32 %v102_v6, %v96_v7 }
  0xc9   :  { %v472_v9 = vpop.f32.mrf.mxu0 }
  0xca   :  { %501 = vtanh.f32 %v104_v8 }
  0xd7   :  { %v502_v10 = vpop.eup %501 }
  0xd8   :  { %476 = vmatmul.mubr.msk.f32.vlgmr.msra.gmra.mxu1 %vm106_vm4, %v502_v10 }
  0xd9   :  { %479 = vmatpush3.msk.msra.mxu1 %vm110_vm3, %v100_v5  ;;  %480 = vmatprep.mubr.msk.f32.mxu1 %vm532_vm1, %v531_v1 }
  0xda   :  { %488 = vmatprep.subr.mxu1 %v531_v1 }
 0x198   :  { %v179_v11 = vpop.f32.mrf.mxu1 }
 0x199   :  { %v183_v12 = vadd.f32 %v179_v11, %v96_v7 }
 0x19a   :  { %v477_v13 = vpop.f32.mrf.mxu1 }
 0x19b   :  { %v184_v14 = vmul.f32 %v183_v12, %v102_v6 }
 0x19d   :  { %503 = vtanh.f32 %v184_v14 }
 0x1aa   :  { %v504_v15 = vpop.eup %503 }
 0x1ab   :  { %481 = vmatmul.mubr.msk.f32.vlgmr.msra.gmra.mxu1 %vm106_vm4, %v504_v15 }
 0x1ac   :  { %494 = vmatprep.mubr.msk.f32.mxu1 %vm532_vm1, %v531_v1  ;;  %489 = vmatpush3.msk.msra.mxu1 %vm350_vm5, %v345_v21 }
 0x1ad   :  { %490 = vmatprep.subr.mxu1 %v531_v1 }
 0x1ae   :  { %491 = vmatpush3.msra.mxu1 %v344_v22 }
 0x1af   :  { %492 = vmatprep.subr.mxu1 %v531_v1 }
 0x1b0   :  { %493 = vmatpush3.msra.mxu1 %v343_v27 }
 0x26b   :  { %v255_v16 = vpop.f32.mrf.mxu1 }
 0x26c   :  { %v259_v17 = vadd.f32 %v255_v16, %v96_v7 }
 0x26d   :  { %v482_v18 = vpop.f32.mrf.mxu1 }
 0x26e   :  { %v260_v19 = vmul.f32 %v259_v17, %v102_v6 }
 0x270   :  { %505 = vtanh.f32 %v260_v19 }
 0x27d   :  { %v506_v20 = vpop.eup %505 }
 0x27e   :  { %486 = vmatmul.mubr.msk.f32.vlgmr.msra.gmra.mxu0 %vm106_vm4, %v506_v20 }
 0x33e   :  { %v331_v23 = vpop.f32.mrf.mxu0 }
 0x33f   :  { %v335_v24 = vadd.f32 %v331_v23, %v96_v7 }
 0x340   :  { %v487_v25 = vpop.f32.mrf.mxu0 }
 0x341   :  { %v336_v26 = vmul.f32 %v335_v24, %v102_v6 }
 0x343   :  { %507 = vtanh.f32 %v336_v26 }
 0x350   :  { %v508_v28 = vpop.eup %507 }
 0x351   :  { %339 = vrot.lane.b32.xlu0 %v508_v28, %s533_s28 }
 0x3c3   :  { %v340_v29 = vpop.permute.xlu0 %339 }
 0x3c4   :  { %v342_v30 = vsel %vm22_vm2, %v18_v4, %v340_v29 }
 0x3c5   :  { %495 = vmatmul.mubr.msk.f32.vlgmr.msra.gmra.mxu1 %vm346_vm6, %v342_v30 }
 0x485   :  { %v420_v31 = vpop.f32.mrf.mxu1 }
 0x486   :  { %425 = vst.msk [vmem:[#allocation2] sm:$0x1] %vm424_vm7, %v420_v31 }
 0x487   :  { %v496_v32 = vpop.f32.mrf.mxu1 }
 0x488   :  { %520 = shalt.err (!%p517_p4)
}
 0x489   :  { %435 = dma.vmem_to_hbm [thread:$0]  %s433_s30, 16, %s601_s4, [#allocation3]  }
 0x48a   :  { %529 = dma.done.wait [#allocation3], 16  }
 0x48b   :  { %530 = vsyncadd [#allocation3], 4294967280 }
 0x48c   :  { %439 = vsyncpa [#allocation3], 1 }

</bundles_post_ra>
